<compile_context>
chip_gen: v6e
topology: v6e:2x2x1
jax: 0.10.0
libtpu: 0.0.40
codegen_flags: <defaults>
</compile_context>

<pallas_src>
import functools
import math

import jax
import jax.numpy as jnp
from jax import lax
from jax.experimental import pallas as pl
from jax.experimental.pallas import tpu as pltpu  # noqa: F401  (TPU-specific tuning hooks)

T = 3  # context length fixed by the module: Linear(3 * embedding_dim, ...)


def _round_up(x, m):
    return (x + m - 1) // m * m


def _gelu_exact(x):
    # PyTorch nn.GELU() default = exact erf formulation (kept for parity).
    return 0.5 * x * (1.0 + lax.erf(x * (1.0 / math.sqrt(2.0))))


def lm_kernel(tok_ref, table_ref, w23_ref, out_ref, *, v_pad, ones_col):
    tok = tok_ref[...]                       # (Bp, T) int32
    Bp = tok.shape[0]
    TVp, _ = table_ref.shape                 # (T*Vp, Hp)

    # Combined one-hot over all 3 positions (lane-padded vocab Vp):
    #   onehot[b, t*Vp + v] = (tok[b, t] == v)
    # One hoisted iota; 3 VALU compares; one MXU matmul below replaces
    # 3 embedding gathers + concat + feats@w1 (+ the b1 add, folded into table).
    iota = lax.broadcasted_iota(jnp.int32, (Bp, TVp), 1)
    onehot = jnp.zeros((Bp, TVp), table_ref.dtype)
    for t in range(T):
        onehot = onehot + ((tok[:, t:t + 1] + t * v_pad) == iota).astype(table_ref.dtype)

    # Embedding + Linear1 + b1 (all folded into `table`):  h = onehot @ table
    h = jnp.dot(onehot, table_ref[...], preferred_element_type=jnp.float32)
    g = _gelu_exact(h)                       # exact erf GELU, f32 (PyTorch parity)

    # Inject the constant-1 column that activates the b3 row folded into w23.
    col = lax.broadcasted_iota(jnp.int32, g.shape, 1)
    g = jnp.where(col == ones_col, jnp.float32(1.0), g)

    # Linear2 (no bias) + Linear3 + b3 (folded):  out = g @ w23
    out = jnp.dot(g.astype(w23_ref.dtype), w23_ref[...], preferred_element_type=jnp.float32)
    out_ref[...] = out.astype(out_ref.dtype)  # (Bp, Vp), lane-dense store


def make_forward(emb, w1, b1, w2, w3, b3, *, mxu_dtype=jnp.bfloat16):
    """Runs the weight fold ONCE (amortized) and returns a jitted forward(tokens).

    Dense weights are expected in (in, out) layout (= PyTorch weight.T).
    """
    V, E = emb.shape
    H = w1.shape[1]
    Vp = _round_up(V, 128)        # lane-dense vocab / output width
    Hp = _round_up(H + 1, 128)    # +1 row reserved for the folded b3

    # feats @ w1 == sum_t emb[tok_t] @ w1[t*E:(t+1)*E]  ->  per-position tables.
    # b1 fold relies on every one-hot row summing to exactly T=3 (no masked/pad
    # tokens contribute, since padded table rows are zero).
    w1r = w1.reshape(T, E, H)
    table = jnp.einsum('ve,teh->tvh', emb, w1r) + b1.reshape(1, 1, H) / float(T)
    table = jnp.pad(table, ((0, 0), (0, Vp - V), (0, Hp - H)))
    table = table.reshape(T * Vp, Hp).astype(mxu_dtype)

    # Linear2 + Linear3 fused; b3 appended as row index H (activated by the
    # constant-1 column the kernel injects after GELU).
    w23 = jnp.concatenate([w2 @ w3, b3.reshape(1, -1)], axis=0)       # (H+1, V)
    w23 = jnp.pad(w23, ((0, Hp - (H + 1)), (0, Vp - V))).astype(mxu_dtype)

    table = jax.block_until_ready(table)
    w23 = jax.block_until_ready(w23)

    kernel = functools.partial(lm_kernel, v_pad=Vp, ones_col=H)
    full = lambda shape: pl.BlockSpec(shape, lambda: (0,) * len(shape))

    @jax.jit
    def forward(tokens):
        B = tokens.shape[0]
        Bp = _round_up(max(B, 8), 8)                       # sublane-aligned batch
        tok_p = jnp.pad(tokens.astype(jnp.int32), ((0, Bp - B), (0, 0)))
        out = pl.pallas_call(
            kernel,
            out_shape=jax.ShapeDtypeStruct((Bp, Vp), jnp.float32),
            grid=(),  # whole problem is tiny -> single invocation, full-array blocks
            in_specs=[
                full((Bp, T)),
                full(table.shape),
                full(w23.shape),
            ],
            out_specs=full((Bp, Vp)),
        )(tok_p, table, w23)
        return out[:B, :V]

    return forward


def init_params(key, vocab_size, embedding_dim, hidden_dim, output_features):
    ks = jax.random.split(key, 6)
    emb = jax.random.normal(ks[0], (vocab_size, embedding_dim), jnp.float32) * 0.1
    w1 = jax.random.normal(ks[1], (3 * embedding_dim, hidden_dim), jnp.float32) * 0.1
    b1 = jax.random.normal(ks[2], (1, hidden_dim), jnp.float32) * 0.1
    w2 = jax.random.normal(ks[3], (hidden_dim, output_features), jnp.float32) * 0.1
    w3 = jax.random.normal(ks[4], (output_features, vocab_size), jnp.float32) * 0.1
    b3 = jax.random.normal(ks[5], (1, vocab_size), jnp.float32) * 0.1
    return emb, w1, b1, w2, w3, b3


def reference_forward(tokens, emb, w1, b1, w2, w3, b3):
    # Pure-JAX f32 reference mirroring the PyTorch forward (unfolded weights).
    embedded = emb[tokens]                             # (B, 3, E)
    feats = embedded.reshape(tokens.shape[0], -1)      # (B, 3E)
    h = _gelu_exact(feats @ w1 + b1)
    f = h @ w2
    return f @ w3 + b3


if __name__ == "__main__":
    vocab_size, embedding_dim, hidden_dim, output_features = 32, 16, 32, 16
    batch = 8

    key = jax.random.PRNGKey(0)
    pkey, tkey = jax.random.split(key)
    params = init_params(pkey, vocab_size, embedding_dim, hidden_dim, output_features)
    tokens = jax.random.randint(tkey, (batch, 3), 0, vocab_size, dtype=jnp.int32)

    # Weight-load-time fold: done once, amortized across all forward calls.
    forward = make_forward(*params)

    out = jax.block_until_ready(forward(tokens))

    ref = reference_forward(tokens, *params)
    assert out.shape == (batch, vocab_size)
    # bf16 matmul operands (f32 accumulate) -> tolerance loosened vs pure-f32 path.
    assert jnp.allclose(out, ref, atol=1e-2, rtol=1e-2), float(jnp.abs(out - ref).max())

    print("KERNEL_OK")
</pallas_src>

<mosaic_0001>
module attributes {stable_mosaic.version = 11 : i64} {
  func.func @lm_kernel(%arg0: memref<8x3xi32, #tpu.memory_space<vmem>>, %arg1: memref<384x128xbf16, #tpu.memory_space<vmem>>, %arg2: memref<128x128xbf16, #tpu.memory_space<vmem>>, %arg3: memref<8x128xf32, #tpu.memory_space<vmem>>) attributes {dimension_semantics = [], scalar_prefetch = 0 : i64, scratch_operands = 0 : i64, tpu.core_type = #tpu.core_type<tc>} {
    %c0 = arith.constant 0 : index
    %c0_0 = arith.constant 0 : index
    %0 = vector.load %arg0[%c0, %c0_0] : memref<8x3xi32, #tpu.memory_space<vmem>>, vector<8x3xi32>
    %1 = tpu.iota {dimensions = array<i32: 1>} : vector<8x384xi32>
    %cst = arith.constant 0.000000e+00 : bf16
    %2 = vector.broadcast %cst : bf16 to vector<8x384xbf16>
    %3 = vector.extract_strided_slice %0 {offsets = [0, 0], sizes = [8, 1], strides = [1, 1]} : vector<8x3xi32> to vector<8x1xi32>
    %c0_i32 = arith.constant 0 : i32
    %4 = vector.broadcast %c0_i32 : i32 to vector<8x1xi32>
    %5 = arith.addi %3, %4 : vector<8x1xi32>
    %6 = vector.broadcast %5 : vector<8x1xi32> to vector<8x384xi32>
    %7 = arith.cmpi eq, %6, %1 : vector<8x384xi32>
    %8 = arith.extui %7 : vector<8x384xi1> to vector<8x384xi32>
    %9 = arith.sitofp %8 : vector<8x384xi32> to vector<8x384xf32>
    %10 = arith.truncf %9 : vector<8x384xf32> to vector<8x384xbf16>
    %11 = arith.addf %2, %10 : vector<8x384xbf16>
    %12 = vector.extract_strided_slice %0 {offsets = [0, 1], sizes = [8, 1], strides = [1, 1]} : vector<8x3xi32> to vector<8x1xi32>
    %c128_i32 = arith.constant 128 : i32
    %13 = vector.broadcast %c128_i32 : i32 to vector<8x1xi32>
    %14 = arith.addi %12, %13 : vector<8x1xi32>
    %15 = vector.broadcast %14 : vector<8x1xi32> to vector<8x384xi32>
    %16 = arith.cmpi eq, %15, %1 : vector<8x384xi32>
    %17 = arith.extui %16 : vector<8x384xi1> to vector<8x384xi32>
    %18 = arith.sitofp %17 : vector<8x384xi32> to vector<8x384xf32>
    %19 = arith.truncf %18 : vector<8x384xf32> to vector<8x384xbf16>
    %20 = arith.addf %11, %19 : vector<8x384xbf16>
    %21 = vector.extract_strided_slice %0 {offsets = [0, 2], sizes = [8, 1], strides = [1, 1]} : vector<8x3xi32> to vector<8x1xi32>
    %c256_i32 = arith.constant 256 : i32
    %22 = vector.broadcast %c256_i32 : i32 to vector<8x1xi32>
    %23 = arith.addi %21, %22 : vector<8x1xi32>
    %24 = vector.broadcast %23 : vector<8x1xi32> to vector<8x384xi32>
    %25 = arith.cmpi eq, %24, %1 : vector<8x384xi32>
    %26 = arith.extui %25 : vector<8x384xi1> to vector<8x384xi32>
    %27 = arith.sitofp %26 : vector<8x384xi32> to vector<8x384xf32>
    %28 = arith.truncf %27 : vector<8x384xf32> to vector<8x384xbf16>
    %29 = arith.addf %20, %28 : vector<8x384xbf16>
    %c0_1 = arith.constant 0 : index
    %c0_2 = arith.constant 0 : index
    %30 = vector.load %arg1[%c0_1, %c0_2] : memref<384x128xbf16, #tpu.memory_space<vmem>>, vector<384x128xbf16>
    %cst_3 = arith.constant dense<0.000000e+00> : vector<8x128xf32>
    %31 = tpu.matmul %29, %30, %cst_3 {dimension_numbers = #tpu.dot_dimension_numbers<[1], [0], [0], [1], [0, 0, 1, 1], [], []>} : vector<8x384xbf16>, vector<384x128xbf16>, vector<8x128xf32> -> vector<8x128xf32>
    %cst_4 = arith.constant 5.000000e-01 : f32
    %32 = vector.broadcast %cst_4 : f32 to vector<8x128xf32>
    %33 = arith.mulf %32, %31 : vector<8x128xf32>
    %cst_5 = arith.constant 0.707106769 : f32
    %34 = vector.broadcast %cst_5 : f32 to vector<8x128xf32>
    %35 = arith.mulf %31, %34 : vector<8x128xf32>
    %36 = math.erf %35 : vector<8x128xf32>
    %cst_6 = arith.constant 1.000000e+00 : f32
    %37 = vector.broadcast %cst_6 : f32 to vector<8x128xf32>
    %38 = arith.addf %37, %36 : vector<8x128xf32>
    %39 = arith.mulf %33, %38 : vector<8x128xf32>
    %40 = tpu.iota {dimensions = array<i32: 1>} : vector<8x128xi32>
    %c32_i32 = arith.constant 32 : i32
    %41 = vector.broadcast %c32_i32 : i32 to vector<8x128xi32>
    %42 = arith.cmpi eq, %40, %41 : vector<8x128xi32>
    %cst_7 = arith.constant 1.000000e+00 : f32
    %43 = vector.broadcast %cst_7 : f32 to vector<8x128xf32>
    %44 = arith.select %42, %43, %39 : vector<8x128xi1>, vector<8x128xf32>
    %45 = arith.truncf %44 : vector<8x128xf32> to vector<8x128xbf16>
    %c0_8 = arith.constant 0 : index
    %c0_9 = arith.constant 0 : index
    %46 = vector.load %arg2[%c0_8, %c0_9] : memref<128x128xbf16, #tpu.memory_space<vmem>>, vector<128x128xbf16>
    %cst_10 = arith.constant dense<0.000000e+00> : vector<8x128xf32>
    %47 = tpu.matmul %45, %46, %cst_10 {dimension_numbers = #tpu.dot_dimension_numbers<[1], [0], [0], [1], [0, 0, 1, 1], [], []>} : vector<8x128xbf16>, vector<128x128xbf16>, vector<8x128xf32> -> vector<8x128xf32>
    %c0_11 = arith.constant 0 : index
    %c0_12 = arith.constant 0 : index
    %48 = vector.load %arg3[%c0_11, %c0_12] : memref<8x128xf32, #tpu.memory_space<vmem>>, vector<8x128xf32>
    tpu.vector_store %arg3[%c0_11, %c0_12], %47 {strides = array<i32>} : memref<8x128xf32, #tpu.memory_space<vmem>>, vector<8x128xf32>,
    return
  }
}

</mosaic_0001>

<bundles_post_ra>
// kernel: forward.1
= control target key start
LH: loop header
LB: loop body
LE: loop exit
PB: predicated region body
PF: predicated region fallthrough
CT: control target
= control target key end

     0   :  { %8 = vsyncpa [#allocation3], 0  ;;  %s820_s0 = inlined_call_operand.vmem [shape: s32[8,3], index: 0, kind: input, shape index: {}]   ;;  %s821_s1 = inlined_call_operand.hbm [shape: bf16[384,128], index: 1, kind: input, shape index: {}]   ;;  %s822_s2 = inlined_call_operand.hbm [shape: bf16[128,128], index: 2, kind: input, shape index: {}]   ;;  %s823_s3 = inlined_call_operand.hbm [shape: f32[8,128], index: 3, kind: output, shape index: {}]  }
   0x1   :  { %9 = vsyncpa [#allocation6], 0 }
   0x2   :  { %10 = vsyncpa [#allocation4], 0  ;;  %s741_s12 = smov [#allocation2]  }
   0x3   :  { %s18_s13 = sshll.u32 %s741_s12, 4  ;;  %s19_s13 = int_to_ptr.vmem [resolvable:$true] %s18_s13 }
   0x4   :  { %s683_s14 = scalar_lea.vmem %s19_s13, 3072  ;;  %p688_p1 = scmp.lt.s32.totalorder %s19_s13, %s19_s13 }
   0x5   :  { %p684_p0 = scmp.ne.s32.totalorder %s19_s13, %s683_s14  ;;  %p689_p2 = scmp.lt.s32.totalorder %s683_s14, %s683_s14 }
   0x7   :  { %p690_p3 = por %p689_p2, %p688_p1 }
   0x9   :  { %p691_p4 = pnand %p690_p3, %p684_p0 }
   0xb   :  { %694 = shalt.err (!%p691_p4)
}
   0xc   :  { %s742_s15 = smov 64   ;;  %s743_s16 = smov 4  }
   0xd   :  { %24 = dma.hbm_to_vmem [thread:$0]  %s821_s1, 3072, %s19_s13, [#allocation3], %s742_s15, %s742_s15, %s743_s16  }
   0xe   :  { %s744_s19 = smov [#allocation5]  }
   0xf   :  { %s30_s20 = sshll.u32 %s744_s19, 4  ;;  %s31_s20 = int_to_ptr.vmem [resolvable:$true] %s30_s20 }
  0x10   :  { %s703_s21 = scalar_lea.vmem %s31_s20, 1024  ;;  %p708_p6 = scmp.lt.s32.totalorder %s31_s20, %s31_s20 }
  0x11   :  { %p704_p5 = scmp.ne.s32.totalorder %s31_s20, %s703_s21  ;;  %p709_p7 = scmp.lt.s32.totalorder %s703_s21, %s703_s21 }
  0x13   :  { %p710_p8 = por %p709_p7, %p708_p6 }
  0x15   :  { %p711_p9 = pnand %p710_p8, %p704_p5 }
  0x17   :  { %714 = shalt.err (!%p711_p9)
}
  0x18   :  { %36 = dma.hbm_to_vmem [thread:$0]  %s822_s2, 1024, %s31_s20, [#allocation6], %s742_s15, %s742_s15, %s743_s16  }
  0x19   :  { %735 = dma.done.wait [#allocation3], 3072  }
  0x1a   :  { %736 = vsyncadd [#allocation3], 4294964224 }
  0x1b   :  { %737 = dma.done.wait [#allocation6], 1024  }
  0x1c   :  { %738 = vsyncadd [#allocation6], 4294966272  ;;  %v745_v0 = vmov 0   ;;  %v746_v1 = vmov 2   ;;  %v747_v2 = vmov 0.0   ;;  %v44_v3 = vld [vmem:[%s820_s0] sm:$0xff]  ;;  %v45_v31 = vlaneseq }
  0x1d   :  { %637 = vset.pattern.permute.xlu0 %v745_v0  ;;  %639 = vset.pattern.permute.xlu1 %v746_v1  ;;  %v67_v4 = vadd.s32 128, %v44_v3  ;;  %v86_v5 = vadd.s32 256, %v44_v3  ;;  %v641_v6 = vld [vmem:[#allocation2 + $0x78] sm:$0xff]   ;;  %v644_v9 = vld [vmem:[#allocation2 + $0x70] sm:$0xff]   ;;  %v748_v10 = vmov 1   ;;  %v647_v13 = vld [vmem:[#allocation2 + $0x68] sm:$0xff]  }
  0x1e   :  { %587 = vmatprep.subr.bf16.mxu1 %v747_v2  ;;  %50 = vperm.xlu0 %637, %v44_v3   ;;  %v642_v7 = vld [vmem:[#allocation2 + $0xb8] sm:$0xff]   ;;  %v645_v11 = vld [vmem:[#allocation2 + $0xb0] sm:$0xff]   ;;  %vm749_vm0 = vmmov 0   ;;  %v648_v14 = vld [vmem:[#allocation2 + $0xa8] sm:$0xff]   ;;  %v791_v32 = vand.u32 127, %v45_v31  ;;  %s750_s0 = smov [#allocation7]  }
  0x1f   :  { %88 = vperm.xlu1 %639, %v86_v5   ;;  %547 = vmatprep.subr.bf16.mxu0 %v641_v6  ;;  %v643_v8 = vld [vmem:[#allocation2 + $0x38] sm:$0xff]   ;;  %v646_v12 = vld [vmem:[#allocation2 + $0x30] sm:$0xff]   ;;  %v649_v15 = vld [vmem:[#allocation2 + $0x28] sm:$0xff]   ;;  %s496_s2 = sshll.u32 %s750_s0, 4  ;;  %s497_s2 = int_to_ptr.vmem [resolvable:$true] %s496_s2 }
  0x20   :  { %588 = vmatpush3.bf16.msra.mxu1 %v642_v7  ;;  %548 = vmatpush3.bf16.msra.mxu0 %v643_v8  ;;  %v650_v16 = vld [vmem:[#allocation2 + $0x60] sm:$0xff]   ;;  %v653_v19 = vld [vmem:[#allocation2 + $0x58] sm:$0xff]   ;;  %v656_v22 = vld [vmem:[#allocation2 + $0x50] sm:$0xff]   ;;  %v47_v33 = vadd.s32 128, %v791_v32  ;;  %v48_v34 = vadd.s32 256, %v791_v32  ;;  %vm382_vm10 = vcmp.eq.s32.totalorder %v791_v32, 32  ;;  %p720_p11 = scmp.lt.s32.totalorder %s497_s2, %s497_s2 }
  0x21   :  { %589 = vmatprep.subr.bf16.mxu1 %v747_v2  ;;  %549 = vmatprep.subr.bf16.mxu0 %v644_v9  ;;  %v651_v17 = vld [vmem:[#allocation2 + $0xa0] sm:$0xff]   ;;  %v654_v20 = vld [vmem:[#allocation2 + $0x98] sm:$0xff]   ;;  %v657_v23 = vld [vmem:[#allocation2 + $0x90] sm:$0xff]   ;;  %s715_s25 = scalar_lea.vmem %s497_s2, 128 }
  0x22   :  { %638 = vset.pattern.permute.xlu0 %v748_v10  ;;  %603 = vmatprep.mubr.msk.bf16.mxu1 %vm749_vm0, %v747_v2  ;;  %v652_v18 = vld [vmem:[#allocation2 + $0x20] sm:$0xff]   ;;  %v655_v21 = vld [vmem:[#allocation2 + $0x18] sm:$0xff]   ;;  %v658_v24 = vld [vmem:[#allocation2 + $0x10] sm:$0xff]   ;;  %p716_p10 = scmp.ne.s32.totalorder %s497_s2, %s715_s25  ;;  %p721_p12 = scmp.lt.s32.totalorder %s715_s25, %s715_s25 }
  0x23   :  { %69 = vperm.xlu0 %638, %v67_v4   ;;  %v659_v25 = vld [vmem:[#allocation2 + $0x48] sm:$0xff]   ;;  %v662_v28 = vld [vmem:[#allocation2 + $0x40] sm:$0xff]   ;;  %v666_v3 = vld [vmem:[#allocation5 + $0x30] sm:$0xff]  }
  0x24   :  { %590 = vmatpush3.bf16.msra.mxu1 %v645_v11  ;;  %550 = vmatpush3.bf16.msra.mxu0 %v646_v12  ;;  %v660_v26 = vld [vmem:[#allocation2 + $0x88] sm:$0xff]   ;;  %v663_v29 = vld [vmem:[#allocation2 + $0x80] sm:$0xff]   ;;  %v669_v6 = vld [vmem:[#allocation5 + $0x18] sm:$0xff]   ;;  %p722_p13 = por %p721_p12, %p720_p11 }
  0x25   :  { %591 = vmatprep.subr.bf16.mxu1 %v747_v2  ;;  %551 = vmatprep.subr.bf16.mxu0 %v647_v13  ;;  %v661_v27 = vld [vmem:[#allocation2 + $0x8] sm:$0xff]   ;;  %v664_v30 = vld [vmem:[#allocation2] sm:$0xff]   ;;  %v670_v7 = vld [vmem:[#allocation5 + $0x10] sm:$0xff]  }
  0x26   :  { %v667_v4 = vld [vmem:[#allocation5 + $0x28] sm:$0xff]   ;;  %v668_v5 = vld [vmem:[#allocation5 + $0x20] sm:$0xff]   ;;  %p723_p0 = pnand %p722_p13, %p716_p10 }
  0x27   :  { %640 = vset.pattern.permute.xlu0 %v746_v1  ;;  %v665_v1 = vld [vmem:[#allocation5 + $0x38] sm:$0xff]   ;;  %v671_v8 = vld [vmem:[#allocation5 + $0x8] sm:$0xff]   ;;  %v672_v9 = vld [vmem:[#allocation5] sm:$0xff]  }
  0x28   :  { %592 = vmatpush3.bf16.msra.mxu1 %v648_v14  ;;  %552 = vmatpush3.bf16.msra.mxu0 %v649_v15 }
  0x29   :  { %593 = vmatprep.subr.bf16.mxu1 %v747_v2  ;;  %553 = vmatprep.subr.bf16.mxu0 %v650_v16 }
  0x2c   :  { %594 = vmatpush3.bf16.msra.mxu1 %v651_v17  ;;  %554 = vmatpush3.bf16.msra.mxu0 %v652_v18 }
  0x2d   :  { %595 = vmatprep.subr.bf16.mxu1 %v747_v2  ;;  %555 = vmatprep.subr.bf16.mxu0 %v653_v19 }
  0x30   :  { %596 = vmatpush3.bf16.msra.mxu1 %v654_v20  ;;  %556 = vmatpush3.bf16.msra.mxu0 %v655_v21 }
  0x31   :  { %597 = vmatprep.subr.bf16.mxu1 %v747_v2  ;;  %557 = vmatprep.subr.bf16.mxu0 %v656_v22 }
  0x34   :  { %598 = vmatpush3.bf16.msra.mxu1 %v657_v23  ;;  %558 = vmatpush3.bf16.msra.mxu0 %v658_v24 }
  0x35   :  { %599 = vmatprep.subr.bf16.mxu1 %v747_v2  ;;  %559 = vmatprep.subr.bf16.mxu0 %v659_v25 }
  0x38   :  { %600 = vmatpush3.bf16.msra.mxu1 %v660_v26  ;;  %560 = vmatpush3.bf16.msra.mxu0 %v661_v27 }
  0x39   :  { %601 = vmatprep.subr.bf16.mxu1 %v747_v2  ;;  %561 = vmatprep.subr.bf16.mxu0 %v662_v28 }
  0x3c   :  { %602 = vmatpush3.bf16.msra.mxu1 %v663_v29  ;;  %562 = vmatpush3.bf16.msra.mxu0 %v664_v30 }
  0x3d   :  { %607 = vmatprep.subr.bf16.mxu0 %v747_v2 }
  0x99   :  { %v51_v35 = vpop.permute.xlu0 %50 }
  0x9a   :  { %vm52_vm1 = vcmp.eq.s32.totalorder %v51_v35, %v791_v32  ;;  %vm53_vm2 = vcmp.eq.s32.totalorder %v51_v35, %v47_v33  ;;  %vm54_vm3 = vcmp.eq.s32.totalorder %v51_v35, %v48_v34  ;;  %v89_v39 = vpop.permute.xlu1 %88 }
  0x9b   :  { %v506_v36 = vsel %vm52_vm1, 1.0, %v747_v2  ;;  %v507_v37 = vsel %vm53_vm2, 1.0, %v747_v2  ;;  %v508_v38 = vsel %vm54_vm3, 1.0, %v747_v2  ;;  %vm90_vm4 = vcmp.eq.s32.totalorder %v89_v39, %v791_v32 }
  0x9c   :  { %v61_v40 = vpack.c.bf16 %v506_v36, %v506_v36  ;;  %v63_v41 = vpack.c.bf16 %v508_v38, %v508_v38  ;;  %vm91_vm5 = vcmp.eq.s32.totalorder %v89_v39, %v47_v33  ;;  %vm92_vm6 = vcmp.eq.s32.totalorder %v89_v39, %v48_v34 }
  0x9d   :  { %v512_v42 = vsel %vm90_vm4, 1.0, %v747_v2  ;;  %v62_v43 = vpack.c.bf16 %v507_v37, %v507_v37  ;;  %v513_v44 = vsel %vm91_vm5, 1.0, %v747_v2  ;;  %v514_v48 = vsel %vm92_vm6, 1.0, %v747_v2 }
  0x9e   :  { %v64_v45 = vadd.bf16 0, %v61_v40  ;;  %v66_v46 = vadd.bf16 0, %v63_v41  ;;  %v70_v47 = vpop.permute.xlu0 %69  ;;  %v99_v49 = vpack.c.bf16 %v512_v42, %v512_v42  ;;  %v101_v50 = vpack.c.bf16 %v514_v48, %v514_v48 }
  0x9f   :  { %vm71_vm7 = vcmp.eq.s32.totalorder %v70_v47, %v791_v32  ;;  %vm72_vm8 = vcmp.eq.s32.totalorder %v70_v47, %v47_v33  ;;  %vm73_vm9 = vcmp.eq.s32.totalorder %v70_v47, %v48_v34  ;;  %v65_v54 = vadd.bf16 0, %v62_v43 }
  0xa0   :  { %v509_v51 = vsel %vm71_vm7, 1.0, %v747_v2  ;;  %v510_v52 = vsel %vm72_vm8, 1.0, %v747_v2  ;;  %v511_v53 = vsel %vm73_vm9, 1.0, %v747_v2  ;;  %v100_v58 = vpack.c.bf16 %v513_v44, %v513_v44 }
  0xa1   :  { %v80_v55 = vpack.c.bf16 %v509_v51, %v509_v51  ;;  %v81_v56 = vpack.c.bf16 %v510_v52, %v510_v52  ;;  %v82_v57 = vpack.c.bf16 %v511_v53, %v511_v53 }
  0xa3   :  { %v83_v59 = vadd.bf16 %v80_v55, %v64_v45  ;;  %v85_v60 = vadd.bf16 %v82_v57, %v66_v46  ;;  %v84_v61 = vadd.bf16 %v81_v56, %v65_v54 }
  0xa5   :  { %v103_v62 = vadd.bf16 %v100_v58, %v84_v61  ;;  %v104_v63 = vadd.bf16 %v101_v50, %v85_v60  ;;  %v102_v0 = vadd.bf16 %v99_v49, %v83_v59 }
  0xa7   :  { %329 = vmatprep.mubr.bf16.mxu0 %v103_v62  ;;  %604 = vmatmul.mubr.bf16.vlgmr.msra.gmra.mxu1 %v104_v63 }
  0xa8   :  { %330 = vmatmul.mubr.bf16.vlgmr.msra.gmra.mxu0 %v102_v0 }
  0xa9   :  { %623 = vmatprep.mubr.msk.bf16.mxu0 %vm749_vm0, %v747_v2  ;;  %608 = vmatpush3.bf16.msra.mxu0 %v665_v1 }
  0xaa   :  { %609 = vmatprep.subr.bf16.mxu0 %v747_v2 }
  0xad   :  { %610 = vmatpush3.bf16.msra.mxu0 %v666_v3 }
  0xae   :  { %611 = vmatprep.subr.bf16.mxu0 %v747_v2 }
  0xb1   :  { %612 = vmatpush3.bf16.msra.mxu0 %v667_v4 }
  0xb2   :  { %613 = vmatprep.subr.bf16.mxu0 %v747_v2 }
  0xb5   :  { %614 = vmatpush3.bf16.msra.mxu0 %v668_v5 }
  0xb6   :  { %615 = vmatprep.subr.bf16.mxu0 %v747_v2 }
  0xb9   :  { %616 = vmatpush3.bf16.msra.mxu0 %v669_v6 }
  0xba   :  { %617 = vmatprep.subr.bf16.mxu0 %v747_v2 }
  0xbd   :  { %618 = vmatpush3.bf16.msra.mxu0 %v670_v7 }
  0xbe   :  { %619 = vmatprep.subr.bf16.mxu0 %v747_v2 }
  0xc1   :  { %620 = vmatpush3.bf16.msra.mxu0 %v671_v8 }
  0xc2   :  { %621 = vmatprep.subr.bf16.mxu0 %v747_v2 }
  0xc5   :  { %622 = vmatpush3.bf16.msra.mxu0 %v672_v9 }
 0x167   :  { %v371_v10 = vpop.f32.mrf.mxu1 }
 0x168   :  { %v563_v11 = vpop.f32.mrf.mxu0 }
 0x169   :  { %v605_v12 = vpop.f32.mrf.mxu1 }
 0x16a   :  { %v564_v13 = vpop.f32.mrf.mxu0 }
 0x16b   :  { %v565_v14 = vadd.f32 %v564_v13, %v563_v11  ;;  %v374_v15 = vpop.f32.mrf.mxu1 }
 0x16c   :  { %v566_v16 = vpop.f32.mrf.mxu0 }
 0x16d   :  { %v372_v17 = vadd.f32 %v565_v14, %v371_v10  ;;  %v606_v18 = vpop.f32.mrf.mxu1 }
 0x16e   :  { %v567_v19 = vpop.f32.mrf.mxu0 }
 0x16f   :  { %v378_v20 = vmul.f32 0.70710677, %v372_v17  ;;  %v377_v22 = vmul.f32 0.5, %v372_v17 }
 0x171   :  { %673 = verf.f32 %v378_v20 }
 0x17e   :  { %v674_v21 = vpop.eup %673 }
 0x17f   :  { %v380_v23 = vadd.f32 1.0, %v674_v21 }
 0x181   :  { %v381_v24 = vmul.f32 %v380_v23, %v377_v22 }
 0x183   :  { %v383_v2 = vsel %vm382_vm10, 1.0, %v381_v24 }
 0x184   :  { %v384_v25 = vpack.c.bf16 %v383_v2, %v383_v2 }
 0x186   :  { %624 = vmatmul.mubr.bf16.vlgmr.msra.gmra.mxu0 %v384_v25 }
 0x246   :  { %v483_v26 = vpop.f32.mrf.mxu0 }
 0x247   :  { %489 = vst [vmem:[#allocation7] sm:$0xff] %v483_v26 }
 0x248   :  { %v625_v27 = vpop.f32.mrf.mxu0 }
 0x249   :  { %726 = shalt.err (!%p723_p0)
}
 0x24a   :  { %499 = dma.vmem_to_hbm [thread:$0]  %s497_s2, 128, %s823_s3, [#allocation4]   ;;  %v486_v28 = vpop.f32.mrf.mxu0 }
 0x24c   :  { %v626_v29 = vpop.f32.mrf.mxu0 }
 0x24d   :  { %739 = dma.done.wait [#allocation4], 128  }
 0x24e   :  { %740 = vsyncadd [#allocation4], 4294967168 }
 0x24f   :  { %503 = vsyncpa [#allocation3], 1 }
 0x250   :  { %504 = vsyncpa [#allocation6], 1 }
 0x251   :  { %505 = vsyncpa [#allocation4], 1 }

</bundles_post_ra>
